<compile_context>
chip_gen: v6e
topology: v6e:2x2x1
jax: 0.10.0
libtpu: 0.0.40
codegen_flags: <defaults>
</compile_context>

<pallas_src>
import functools

import jax
import jax.numpy as jnp
from jax.experimental import pallas as pl
from jax.experimental.pallas import tpu as pltpu


def _layernorm_kernel(x_ref, a_ref, b_ref, o_ref, *, eps, inv_nm1):
    # x_ref: (tile_rows, features); a_ref/b_ref: (1, features)
    x = x_ref[...].astype(jnp.float32)
    mean = jnp.mean(x, axis=-1, keepdims=True)
    d = x - mean
    # Unbiased (Bessel-corrected) variance; 1/(features-1) folded into a const.
    var = jnp.sum(d * d, axis=-1, keepdims=True) * jnp.float32(inv_nm1)
    denom = jnp.sqrt(var) + jnp.float32(eps)
    # EUP approximate reciprocal (separate bundle slot) + one Newton-Raphson
    # step on the (tile_rows, 1) column => f32 accuracy, negligible VALU cost.
    inv = pl.reciprocal(denom, approx=True)
    inv = inv * (jnp.float32(2.0) - denom * inv)
    a = a_ref[...].astype(jnp.float32)
    b = b_ref[...].astype(jnp.float32)
    o_ref[...] = (a * (d * inv) + b).astype(o_ref.dtype)


def _round_up(x, m):
    return ((x + m - 1) // m) * m


def _vmem_capacity_bytes():
    try:
        return int(pltpu.get_tpu_info().vmem_capacity_bytes)
    except Exception:
        return 64 * 1024 * 1024  # assume the smallest per-TC VMEM (v7x)


def _choose_tile_rows(rows, features, itemsize, sublane,
                      target_tile_bytes, vmem_budget_bytes):
    """Byte-based row-tile choice: big enough to amortize the ~0.35 us/step
    pipeline overhead, small enough that the live working set (double-buffered
    in/out storage tiles + f32 temporaries) fits the generation's VMEM budget,
    while keeping >= 8 grid steps for software pipelining."""
    storage_row = max(features * itemsize, 1)
    # Live bytes per tile row: 2x input + 2x output double-buffered storage
    # tiles + ~3 full-tile f32 temporaries inside the kernel (upcast x, d, prod).
    live_row = 4 * storage_row + 3 * features * 4
    t = max(sublane, target_tile_bytes // storage_row)
    t = min(t, max(sublane, (vmem_budget_bytes // 2) // live_row))
    # Aim for >= 8 grid steps (>= ~4 per TensorCore on v7x under "parallel").
    t = min(t, _round_up(pl.cdiv(rows, 8), sublane))
    t = max(sublane, (t // sublane) * sublane)
    if t >= rows:
        return rows  # single full-extent block
    return t


def layer_norm(x, a2, b2, eps=1e-6, tile_rows=None):
    """x: (..., features); a2, b2: (features,). Returns same shape/dtype as x."""
    features = x.shape[-1]
    lead = x.shape[:-1]
    rows = 1
    for s in lead:
        rows *= s
    x2d = x.reshape(rows, features)  # contiguous reshape: free in XLA

    itemsize = jnp.dtype(x.dtype).itemsize
    # Sublane packing: 8 rows (f32), 16 (bf16/f16), 32 (int8/fp8).
    sublane = max(8, 32 // max(itemsize, 1))

    vmem_cap = _vmem_capacity_bytes()
    # <=48 MiB scoped budget on 64 MiB v7x, <=96 MiB on 128 MiB v5e/v6e.
    vmem_budget = min(vmem_cap * 3 // 4, 96 * 1024 * 1024)
    target_tile_bytes = (4 * 1024 * 1024 if vmem_cap >= 100 * 1024 * 1024
                         else 2 * 1024 * 1024)

    if tile_rows is None:
        tile_rows = _choose_tile_rows(rows, features, itemsize, sublane,
                                      target_tile_bytes, vmem_budget)

    a2d = a2.reshape(1, features)
    b2d = b2.reshape(1, features)

    # features == 1: torch.std(ddof=1) would give NaN; we return b2 instead.
    inv_nm1 = 1.0 / float(features - 1) if features > 1 else 0.0
    kernel = functools.partial(_layernorm_kernel, eps=float(eps), inv_nm1=inv_nm1)

    # Ragged tail handled by Pallas partial-block masking (OOB stores dropped),
    # so there is no extra pad/slice pass over HBM.
    grid = pl.cdiv(rows, tile_rows)

    storage_row = features * itemsize
    live_est = tile_rows * (4 * storage_row + 3 * features * 4) + 4 * storage_row
    vmem_limit = int(min(vmem_budget, max(32 * 1024 * 1024, 2 * live_est)))

    # TODO(synk): for features < 128 the output block is not lane-dense (masked
    #   vst.msk partial stores); folding groups of rows into the lane dim with
    #   exact segment reductions would recover store bandwidth for narrow
    #   hidden sizes.
    # TODO(synk): add a feature-axis-tiled two-pass path for hidden sizes so
    #   wide that even a sublane-height row tile exceeds the VMEM budget.
    out2d = pl.pallas_call(
        kernel,
        out_shape=jax.ShapeDtypeStruct((rows, features), x.dtype),
        grid_spec=pltpu.PrefetchScalarGridSpec(
            num_scalar_prefetch=0,
            grid=(grid,),
            in_specs=[
                pl.BlockSpec((tile_rows, features), lambda i: (i, 0)),
                pl.BlockSpec((1, features), lambda i: (0, 0)),
                pl.BlockSpec((1, features), lambda i: (0, 0)),
            ],
            out_specs=pl.BlockSpec((tile_rows, features), lambda i: (i, 0)),
        ),
        compiler_params=pltpu.CompilerParams(
            dimension_semantics=("parallel",),
            vmem_limit_bytes=vmem_limit,
        ),
    )(x2d, a2d, b2d)

    return out2d.reshape(*lead, features)


if __name__ == "__main__":
    batch, seq, hidden = 2, 8, 32

    key = jax.random.PRNGKey(0)
    x = jax.random.normal(key, (batch, seq, hidden), dtype=jnp.float32)

    # Deterministic params (matches nn.Parameter(torch.ones/zeros(features))).
    a2 = jnp.ones((hidden,), dtype=jnp.float32)
    b2 = jnp.zeros((hidden,), dtype=jnp.float32)

    out = layer_norm(x, a2, b2, eps=1e-6)
    out = jax.block_until_ready(out)

    # Reference (unbiased std, eps outside sqrt — matches the PyTorch module).
    mean = jnp.mean(x, axis=-1, keepdims=True)
    std = jnp.sqrt(jnp.sum((x - mean) ** 2, axis=-1, keepdims=True) / (hidden - 1))
    ref = a2 * (x - mean) / (std + 1e-6) + b2

    assert out.shape == x.shape and out.dtype == x.dtype
    assert jnp.allclose(out, ref, atol=1e-5, rtol=1e-5), "mismatch vs reference"

    print("KERNEL_OK")
</pallas_src>

<mosaic_0001>
module attributes {stable_mosaic.version = 11 : i64} {
  func.func @_layernorm_kernel(%arg0: i32, %arg1: memref<8x32xf32, #tpu.memory_space<vmem>>, %arg2: memref<1x32xf32, #tpu.memory_space<vmem>>, %arg3: memref<1x32xf32, #tpu.memory_space<vmem>>, %arg4: memref<8x32xf32, #tpu.memory_space<vmem>>) attributes {dimension_semantics = [#tpu.dimension_semantics<parallel>], iteration_bounds = array<i64: 2>, scalar_prefetch = 0 : i64, scratch_operands = 0 : i64, tpu.core_type = #tpu.core_type<tc>, window_params = [{transform_indices = @transform_0, window_bounds = array<i64: 8, 32>}, {pipeline_mode = #tpu.pipeline_mode<synchronous>, transform_indices = @transform_1, window_bounds = array<i64: 1, 32>}, {pipeline_mode = #tpu.pipeline_mode<synchronous>, transform_indices = @transform_2, window_bounds = array<i64: 1, 32>}, {transform_indices = @transform_3, window_bounds = array<i64: 8, 32>}]} {
    %c0 = arith.constant 0 : index
    %c0_0 = arith.constant 0 : index
    %0 = vector.load %arg1[%c0, %c0_0] : memref<8x32xf32, #tpu.memory_space<vmem>>, vector<8x32xf32>
    %cst = arith.constant dense<0.000000e+00> : vector<8xf32>
    %1 = vector.multi_reduction <add>, %0, %cst [1] : vector<8x32xf32> to vector<8xf32>
    %2 = vector.shape_cast %1 : vector<8xf32> to vector<8x1xf32>
    %cst_1 = arith.constant 3.200000e+01 : f32
    %3 = vector.broadcast %cst_1 : f32 to vector<8x1xf32>
    %4 = arith.divf %2, %3 : vector<8x1xf32>
    %5 = vector.broadcast %4 : vector<8x1xf32> to vector<8x32xf32>
    %6 = arith.subf %0, %5 : vector<8x32xf32>
    %7 = arith.mulf %6, %6 : vector<8x32xf32>
    %cst_2 = arith.constant dense<0.000000e+00> : vector<8xf32>
    %8 = vector.multi_reduction <add>, %7, %cst_2 [1] : vector<8x32xf32> to vector<8xf32>
    %9 = vector.shape_cast %8 : vector<8xf32> to vector<8x1xf32>
    %cst_3 = arith.constant 0.0322580636 : f32
    %10 = vector.broadcast %cst_3 : f32 to vector<8x1xf32>
    %11 = arith.mulf %9, %10 : vector<8x1xf32>
    %12 = math.sqrt %11 : vector<8x1xf32>
    %cst_4 = arith.constant 9.99999997E-7 : f32
    %13 = vector.broadcast %cst_4 : f32 to vector<8x1xf32>
    %14 = arith.addf %12, %13 : vector<8x1xf32>
    %15 = tpu.reciprocal %14 {approx = true} : vector<8x1xf32> -> vector<8x1xf32>
    %16 = arith.mulf %14, %15 : vector<8x1xf32>
    %cst_5 = arith.constant 2.000000e+00 : f32
    %17 = vector.broadcast %cst_5 : f32 to vector<8x1xf32>
    %18 = arith.subf %17, %16 : vector<8x1xf32>
    %19 = arith.mulf %15, %18 : vector<8x1xf32>
    %c0_6 = arith.constant 0 : index
    %c0_7 = arith.constant 0 : index
    %20 = vector.load %arg2[%c0_6, %c0_7] : memref<1x32xf32, #tpu.memory_space<vmem>>, vector<1x32xf32>
    %c0_8 = arith.constant 0 : index
    %c0_9 = arith.constant 0 : index
    %21 = vector.load %arg3[%c0_8, %c0_9] : memref<1x32xf32, #tpu.memory_space<vmem>>, vector<1x32xf32>
    %22 = vector.broadcast %19 : vector<8x1xf32> to vector<8x32xf32>
    %23 = arith.mulf %6, %22 : vector<8x32xf32>
    %24 = vector.broadcast %20 : vector<1x32xf32> to vector<8x32xf32>
    %25 = arith.mulf %24, %23 : vector<8x32xf32>
    %26 = vector.broadcast %21 : vector<1x32xf32> to vector<8x32xf32>
    %27 = arith.addf %25, %26 : vector<8x32xf32>
    %c0_10 = arith.constant 0 : index
    %c0_11 = arith.constant 0 : index
    %28 = vector.load %arg4[%c0_10, %c0_11] : memref<8x32xf32, #tpu.memory_space<vmem>>, vector<8x32xf32>
    tpu.vector_store %arg4[%c0_10, %c0_11], %27 {strides = array<i32>} : memref<8x32xf32, #tpu.memory_space<vmem>>, vector<8x32xf32>,
    return
  }
  func.func @transform_0(%arg0: i32) -> (i32, i32) {
    %c0_i32 = arith.constant 0 : i32
    %c0_i32_0 = arith.constant 0 : i32
    return %arg0, %c0_i32 : i32, i32
  }
  func.func @transform_1(%arg0: i32) -> (i32, i32) {
    %c0_i32 = arith.constant 0 : i32
    %c0_i32_0 = arith.constant 0 : i32
    %c0_i32_1 = arith.constant 0 : i32
    return %c0_i32, %c0_i32_0 : i32, i32
  }
  func.func @transform_2(%arg0: i32) -> (i32, i32) {
    %c0_i32 = arith.constant 0 : i32
    %c0_i32_0 = arith.constant 0 : i32
    %c0_i32_1 = arith.constant 0 : i32
    return %c0_i32, %c0_i32_0 : i32, i32
  }
  func.func @transform_3(%arg0: i32) -> (i32, i32) {
    %c0_i32 = arith.constant 0 : i32
    %c0_i32_0 = arith.constant 0 : i32
    return %arg0, %c0_i32 : i32, i32
  }
}

</mosaic_0001>

<bundles_post_ra>
// kernel: tpu_custom_call.1
= control target key start
LH: loop header
LB: loop body
LE: loop exit
PB: predicated region body
PF: predicated region fallthrough
CT: control target
= control target key end

     0   :  { %8 = vsyncpa [#allocation3], 0  ;;  %s647_s0 = inlined_call_operand.hbm [shape: f32[16,32], index: 0, kind: input, shape index: {}]   ;;  %s648_s1 = inlined_call_operand.vmem [shape: f32[1,32], index: 1, kind: input, shape index: {}]   ;;  %s649_s2 = inlined_call_operand.vmem [shape: f32[1,32], index: 2, kind: input, shape index: {}]   ;;  %s650_s3 = inlined_call_operand.hbm [shape: f32[16,32], index: 3, kind: output, shape index: {}]  }
   0x1   :  { %10 = vsyncpa [#allocation3 + $0x1], 0 }
   0x2   :  { %11 = vsyncpa [#allocation4], 0 }
   0x3   :  { %13 = vsyncpa [#allocation4 + $0x1], 0  ;;  %s493_s12 = smov 0   ;;  %s495_s13 = smov 0  }
   0x4   :  { %s497_s14 = smov 0   ;;  %s499_s15 = smov 0  }
   0x5 LB: > { %s514_s16 = sadd.s32 4294967295, %s469_s15   ;;  %s313_s17 = sadd.s32 4294967294, %s469_s15   ;;  %s469_s15 = sphi %s499_s15, %s667_s15   ;;  %s465_s14 = sphi %s497_s14, %s666_s14   ;;  %s461_s13 = sphi %s495_s13, %s665_s13   ;;  %s457_s12 = sphi %s493_s12, %s664_s12  }
   0x6   : > { %s518_s18 = sadd.s32 1, %s469_s15   ;;  %s26_s19 = sadd.s32 1, %s465_s14 }
   0x7   : > { %s23_s20 = ssub.s32 %s469_s15, %s518_s18  ;;  %p33_p0 = scmp.ne.s32.totalorder %s465_s14, %s461_s13 }
   0x8   : > { %p24_p1 = scmp.eq.s32.totalorder %s23_s20, 0  ;;  %p34_p2 = scmp.eq.s32.totalorder %s469_s15, 0 }
   0x9   : > { %p39_p3 = scmp.ne.s32.totalorder %s461_s13, %s457_s12  ;;  %p40_p4 = scmp.eq.s32.totalorder %s514_s16, 0 }
   0xa   : > { %s530_s21 = scalar_select %p24_p1, %s465_s14, %s26_s19  }
   0xb   : > { %p532_p5 = por %p34_p2, %p33_p0  ;;  %p536_p6 = por %p40_p4, %p39_p3 }
   0xc   : > { %p105_p7 = scmp.eq.s32.totalorder %s514_s16, 1  ;;  %p111_p8 = scmp.eq.s32.totalorder %s313_s17, 1 }
   0xd   : > { %s654_s23 = scalar_select %p536_p6, 1, 0 }
   0xe   : > { %p339_p10 = scmp.lt.s32.totalorder %s469_s15, 2  ;;  %p543_p11 = por %p105_p7, %p33_p0 }
   0xf   : > { %p547_p12 = por %p111_p8, %p39_p3  ;;  %s137_s26 = sand.u32 1, %s465_s14  }
  0x10   : > { %s655_s24 = scalar_select %p543_p11, 1, 0 }
  0x11   : > { %s656_s25 = scalar_select %p547_p12, 1, 0 }
  0x12   : > { %s317_s27 = sshll.u32 %s469_s15, 7  ;;  %s316_s28 = sshll.u32 %s137_s26, 3 }
  0x13   : > { %s556_s4 = scalar_lea.hbm %s647_s0, %s317_s27  ;;  %s141_s5 = scalar_lea.vmem [#allocation2], %s316_s28 }
  0x14   : > { %s148_s6 = sshll.u32 %s141_s5, 4  ;;  %p560_p13 = pnand %p339_p10, %p532_p5  ;;  %s564_s6 = int_to_ptr.vmem [resolvable:$true] %s148_s6 }
  0x15   : > { %s138_s8 = scalar_lea.sflag [#allocation3], %s137_s26  ;;  %s377_s9 = scalar_lea.hbm %s556_s4, 128 }
  0x16   : > { %p378_p2 = scmp.ne.s32.totalorder %s556_s4, %s377_s9  ;;  %p379_p3 = pneg %p560_p13 }
  0x17   : > { %s382_s17 = scalar_lea.hbm %s647_s0, 256  ;;  %p383_p5 = scmp.lt.s32.totalorder %s556_s4, %s647_s0 }
  0x18   : > { %p380_p4 = pnand %p379_p3, %p378_p2  ;;  %p384_p8 = scmp.lt.s32.totalorder %s382_s17, %s377_s9 }
  0x1a   : > { %p381_p7 = pneg %p380_p4  ;;  %p385_p10 = por %p384_p8, %p383_p5 }
  0x1c   : > { %p386_p9 = pnand %p385_p10, %p381_p7 }
  0x1e   : > { %389 = shalt.err (!%p386_p9)
}
  0x1f   : > { %s390_s22 = scalar_lea.vmem %s564_s6, 128  ;;  %s471_s26 = smov [#allocation2]  }
  0x20   : > { %p391_p0 = scmp.ne.s32.totalorder %s564_s6, %s390_s22  ;;  %s395_s27 = sshll.u32 %s471_s26, 4  ;;  %s396_s27 = int_to_ptr.vmem [resolvable:$false] %s395_s27 }
  0x21   : > { %s397_s28 = scalar_lea.vmem %s396_s27, 256  ;;  %p398_p4 = scmp.lt.s32.totalorder %s564_s6, %s396_s27 }
  0x22   : > { %p393_p1 = pnand %p391_p0, %p379_p3  ;;  %p399_p12 = scmp.lt.s32.totalorder %s397_s28, %s390_s22 }
  0x24   : > { %p394_p2 = pneg %p393_p1  ;;  %p400_p11 = por %p399_p12, %p398_p4 }
  0x26   : > { %p401_p6 = pnand %p400_p11, %p394_p2 }
  0x28   : > { %404 = shalt.err (!%p401_p6)
}
  0x29   : > { %334 = dma.hbm_to_vmem [thread:$0]  (!%p560_p13), %s556_s4, 128, %s564_s6, %s138_s8  }
  0x2a   : > { %p658_p9 = scmp.lt.s32.totalorder %s469_s15, 3  ;;  %p659_p7 = scmp.ge.s32.totalorder %s469_s15, 1 }
  0x2c   : > { %p154_p0 = pnand %p659_p7, %p658_p9 }
  0x2d   : > { %s591_s29 = sand.u32 (!%p154_p0), 1, %s461_s13   ;;  %p660_p6 = scmp.ne.s32.totalorder (!%p154_p0), %s654_s23, 0 }
  0x2e   : > { %157 = sbr.rel (%p154_p0) target bundleno = 398 (0x18e), region = 32  ;;  %s319_s30 = sshll.u32 (!%p154_p0), %s591_s29, 3 }
  0x2f   : > { %s160_s5 = scalar_lea.sflag (!%p154_p0), [#allocation3], %s591_s29  ;;  %s163_s7 = scalar_lea.vmem (!%p154_p0), [#allocation2], %s319_s30 }
  0x33   : > { %448 = dma.done.wait (%p660_p6), %s160_s5, 128  }
  0x34   : > { %450 = vsyncadd (%p660_p6), %s160_s5, 4294967168  ;;  %vm187_vm0 = vcmask 261120   ;;  %v186_v0 = vld [vmem:[%s163_s7] sm:$0xff]  ;;  %s324_s9 = sshll.u32 %s514_s16, 7  ;;  %s185_s10 = scalar_lea.vmem [#allocation5], %s319_s30 }
  0x35   : > { %v188_v1 = vsel %vm187_vm0, %v186_v0, 0.0  ;;  %v321_v19 = vld [vmem:[%s648_s1] ss:$0 sm:$0xff]  ;;  %s243_s11 = sshll.u32 %s185_s10, 4  ;;  %s241_s20 = scalar_lea.hbm %s650_s3, %s324_s9  ;;  %s244_s11 = int_to_ptr.vmem [resolvable:$true] %s243_s11 }
  0x36   : > { %189 = vadd.xlane.f32.xlu0 %v188_v1  ;;  %v322_v21 = vld [vmem:[%s649_s2] ss:$0 sm:$0xff]  ;;  %s230_s22 = scalar_lea.sflag [#allocation4], %s591_s29  ;;  %s405_s26 = scalar_lea.vmem %s244_s11, 128 }
  0x37   : > { %p406_p11 = scmp.ne.s32.totalorder %s244_s11, %s405_s26  ;;  %p661_p12 = scmp.ne.s32.totalorder %s655_s24, 0 }
  0x38   : > { %s472_s27 = smov [#allocation5]  }
  0x39   : > { %p407_p13 = pnand %p406_p11, %p661_p12  ;;  %s409_s16 = sshll.u32 %s472_s27, 4  ;;  %s410_s16 = int_to_ptr.vmem [resolvable:$false] %s409_s16 }
  0x3a   : > { %s411_s28 = scalar_lea.vmem %s410_s16, 256  ;;  %p412_p3 = scmp.lt.s32.totalorder %s244_s11, %s410_s16 }
  0x3b   : > { %p408_p1 = pneg %p407_p13  ;;  %p413_p5 = scmp.lt.s32.totalorder %s411_s28, %s405_s26 }
  0x3d   : > { %p414_p8 = por %p413_p5, %p412_p3 }
  0x3f   : > { %p415_p10 = pnand %p414_p8, %p408_p1 }
  0xbf   : > { %v190_v2 = vpop.xlane.xlu0 %189 }
  0xc0   : > { %v192_v3 = vmul.f32 0.03125, %v190_v2 }
  0xc2   : > { %v193_v4 = vsub.f32 %v186_v0, %v192_v3 }
  0xc4   : > { %v194_v5 = vmul.f32 %v193_v4, %v193_v4 }
  0xc6   : > { %v195_v6 = vsel %vm187_vm0, %v194_v5, 0.0 }
  0xc7   : > { %196 = vadd.xlane.f32.xlu0 %v195_v6 }
 0x150   : > { %v197_v7 = vpop.xlane.xlu0 %196 }
 0x151   : > { %v198_v8 = vmul.f32 0.032258064, %v197_v7 }
 0x153   : > { %373 = vrsqrt.f32 %v198_v8  ;;  %vm201_vm1 = vcmp.eq.f32.partialorder %v198_v8, inf  ;;  %v204_v11 = vand.u32 2147483648, %v198_v8  ;;  %vm203_vm2 = vcmp.eq.f32.partialorder %v198_v8, 0.0 }
 0x160   : > { %v374_v9 = vpop.eup %373 }
 0x161   : > { %v200_v10 = vmul.f32 %v374_v9, %v198_v8 }
 0x163   : > { %v202_v12 = vsel %vm201_vm1, %v198_v8, %v200_v10 }
 0x164   : > { %v205_v13 = vsel %vm203_vm2, %v204_v11, %v202_v12 }
 0x165   : > { %v206_v14 = vadd.f32 1e-06, %v205_v13 }
 0x167   : > { %375 = vrcp.f32 %v206_v14 }
 0x174   : > { %v376_v15 = vpop.eup %375 }
 0x175   : > { %v208_v16 = vmul.f32 %v376_v15, %v206_v14 }
 0x177   : > { %v209_v17 = vsub.f32 2.0, %v208_v16 }
 0x179   : > { %v210_v18 = vmul.f32 %v376_v15, %v209_v17 }
 0x17b   : > { %v213_v20 = vmul.f32 %v210_v18, %v193_v4 }
 0x17d   : > { %v220_v22 = vmul.f32 %v321_v19, %v213_v20 }
 0x17f   : > { %v227_v23 = vadd.f32 %v322_v21, %v220_v22 }
 0x181   : > { %228 = vst.msk [vmem:[%s185_s10] sm:$0xff] %vm187_vm0, %v227_v23 }
 0x182   : > { %418 = shalt.err (!%p415_p10)
}
 0x183   : > { %s419_s30 = scalar_lea.hbm %s241_s20, 128  ;;  %s423_s7 = scalar_lea.hbm %s650_s3, 256 }
 0x184   : > { %p420_p2 = scmp.ne.s32.totalorder %s241_s20, %s419_s30  ;;  %p424_p7 = scmp.lt.s32.totalorder %s241_s20, %s650_s3 }
 0x185   : > { %p425_p0 = scmp.lt.s32.totalorder %s423_s7, %s419_s30 }
 0x186   : > { %p421_p4 = pnand %p420_p2, %p661_p12 }
 0x187   : > { %p426_p6 = por %p425_p0, %p424_p7 }
 0x188   : > { %p422_p9 = pneg %p421_p4 }
 0x18a   : > { %p427_p11 = pnand %p426_p6, %p422_p9 }
 0x18c   : > { %430 = shalt.err (!%p427_p11)
}
 0x18d   : > { %329 = dma.vmem_to_hbm [thread:$0]  (%p661_p12), %s244_s11, 128, %s241_s20, %s230_s22  }
 0x18e PF: > { %s255_s6 = sand.u32 1, %s457_s12   ;;  %p662_p13 = scmp.ne.s32.totalorder %s656_s25, 0 }
 0x18f   : > { %p663_p1 = scmp.ge.s32.totalorder %s469_s15, 2  ;;  %s256_s8 = scalar_lea.sflag [#allocation4], %s255_s6 }
 0x191   : > { %p336_p3 = pnand %p663_p1, %p662_p13 }
 0x193   : > { %p337_p5 = pneg %p336_p3 }
 0x195   : > { %452 = dma.done.wait (%p337_p5), %s256_s8, 128  }
 0x196   : > { %454 = vsyncadd (%p337_p5), %s256_s8, 4294967168  ;;  %p16_p8 = scmp.ge.s32.totalorder %s518_s18, 4   ;;  %s664_s12 = smov %s461_s13 }
 0x197   : > { %s665_s13 = smov %s465_s14  ;;  %s666_s14 = smov %s530_s21 }
 0x198   : > { %s667_s15 = smov %s518_s18  ;;  %18 = sbr.rel (!%p16_p8) target bundleno = 5 (0x5), region = 77 }
 0x19d   :  { %261 = vsyncpa [#allocation3], 1 }
 0x19e   :  { %263 = vsyncpa [#allocation3 + $0x1], 1 }
 0x19f   :  { %264 = vsyncpa [#allocation4], 1 }
 0x1a0   :  { %266 = vsyncpa [#allocation4 + $0x1], 1 }

</bundles_post_ra>
